<compile_context>
chip_gen: v7x
topology: tpu7x:2x2x1
jax: 0.10.0
libtpu: 0.0.40
codegen_flags: <defaults>
</compile_context>

<pallas_src>
import math

import jax
import jax.numpy as jnp
from jax.experimental import pallas as pl
from jax.experimental.pallas import tpu as pltpu


# ---------------------------------------------------------------------------
# Kernel factory: seq-chunked mean + Linear -> ReLU -> Linear.
#   grid = (batch_tiles, seq_chunks)   [seq axis last, 'arbitrary']
#   x_ref : (TS, TB, E)        when lane_dense=False
#           (TS, TB*E)         when lane_dense=True   (E < 128)
#   acc_ref: f32 running sum scratch, (TB, E) or (1, TB*E)
# ---------------------------------------------------------------------------
def _make_kernel(seq_len, tb, e, lane_dense):
    inv_s = 1.0 / float(seq_len)

    def kernel(x_ref, w1_ref, b1_ref, w2_ref, b2_ref, o_ref, acc_ref):
        j = pl.program_id(1)

        @pl.when(j == 0)
        def _init():
            acc_ref[...] = jnp.zeros_like(acc_ref)

        # f32 accumulation of the (possibly bf16) x chunk -- sum now, scale by 1/S later.
        if lane_dense:
            acc_ref[...] += jnp.sum(x_ref[...], axis=0, dtype=jnp.float32)[None, :]
        else:
            acc_ref[...] += jnp.sum(x_ref[...], axis=0, dtype=jnp.float32)

        @pl.when(j == pl.num_programs(1) - 1)
        def _finish():
            if lane_dense:
                xm = acc_ref[...].reshape(tb, e) * inv_s          # one small relayout
            else:
                xm = acc_ref[...] * inv_s                          # (TB, E) f32
            h = jnp.dot(xm.astype(w1_ref.dtype), w1_ref[...],
                        preferred_element_type=jnp.float32) + b1_ref[...]
            h = jnp.maximum(h, 0.0)                                # ReLU
            out = jnp.dot(h.astype(w2_ref.dtype), w2_ref[...],
                          preferred_element_type=jnp.float32) + b2_ref[...]
            o_ref[...] = out.astype(o_ref.dtype)

    return kernel


# ---------------------------------------------------------------------------
# Tiling heuristics
# ---------------------------------------------------------------------------
def _pick_batch_tile(b_pad):
    # b_pad is a multiple of 8.  Prefer the largest tile (<=256 for the v6e/v7x MXU)
    # that still leaves >=2 steps on the 'parallel' batch axis once the batch is big
    # enough (v7x has 2 TensorCores and only shards a multi-step parallel axis).
    candidates = [tb for tb in (256, 128, 64, 32, 16, 8) if b_pad % tb == 0]
    if b_pad >= 16:
        multi = [tb for tb in candidates if b_pad // tb >= 2]
        if multi:
            return multi[0]
    return candidates[0] if candidates else b_pad


def _pick_seq_tile(seq_len, row_bytes, budget_bytes=8 * 2**20):
    # Largest multiple-of-8 divisor of S whose double-buffered x chunk stays within a
    # modest VMEM budget; fall back to the whole sequence as a single chunk.
    divisors = [ts for ts in range(8, seq_len + 1, 8) if seq_len % ts == 0]
    fitting = [ts for ts in divisors if 2 * ts * row_bytes <= budget_bytes]
    if fitting:
        return max(fitting)
    if divisors:
        return min(divisors)
    return seq_len


# ---------------------------------------------------------------------------
# Wrapper
# ---------------------------------------------------------------------------
def linear_model_decoder_forward(x_sbe, params, *, x_dtype=jnp.bfloat16,
                                 weight_dtype=jnp.float32):
    S, B, E = x_sbe.shape
    hid = params["w1"].shape[0]
    n_out = params["n_out"]
    M = params["w2"].shape[0]                                     # (emsize + 1) * n_out
    assert M == (E + 1) * n_out

    # ---- batch padding to sublane-dense multiple of 8 ----
    B_pad = max(8, ((B + 7) // 8) * 8)
    TB = _pick_batch_tile(B_pad)

    x_itemsize = jnp.dtype(x_dtype).itemsize
    TS = _pick_seq_tile(S, B_pad * E * x_itemsize)
    nb, ns = B_pad // TB, S // TS

    # Pad the output feature dim up to a multiple of 128 -> lane-dense unmasked stores.
    M_pad = ((M + 127) // 128) * 128

    # ---- parameter / input preprocessing (glue, input-independent) ----
    x = x_sbe.astype(x_dtype)                                     # bf16 stream by default
    if B_pad != B:
        x = jnp.pad(x, ((0, 0), (0, B_pad - B), (0, 0)))
    w1_t = params["w1"].T.astype(weight_dtype)                    # (E, hid)
    w2_t = params["w2"].T.astype(weight_dtype)                    # (hid, M)
    b1 = params["b1"][None, :].astype(jnp.float32)                # (1, hid)
    b2 = params["b2"][None, :].astype(jnp.float32)                # (1, M)
    if M_pad != M:
        w2_t = jnp.pad(w2_t, ((0, 0), (0, M_pad - M)))
        b2 = jnp.pad(b2, ((0, 0), (0, M_pad - M)))

    # Lane-dense x view for small emsize (E < 128): (S, B*E), blocked (TS, TB*E).
    lane_dense = (E < 128) and (((TB * E) % 128 == 0) or TB == B_pad)

    # ---- VMEM budget + cost estimate ----
    e_pad = E if E % 128 == 0 else ((E + 127) // 128) * 128       # worst-case lane padding
    w_itemsize = jnp.dtype(weight_dtype).itemsize
    weight_bytes = (w1_t.size + w2_t.size) * w_itemsize + (b1.size + b2.size) * 4
    need = (2 * TS * TB * e_pad * x_itemsize                      # double-buffered x chunk
            + 2 * weight_bytes                                    # worst case (no Buffered(1))
            + 2 * TB * M_pad * 4                                  # output tile
            + TB * e_pad * 4)                                     # accumulator scratch
    try:
        phys_vmem = pltpu.get_tpu_info().vmem_capacity_bytes      # 64 MiB/TC on v7x, 128 MiB else
    except Exception:
        phys_vmem = 64 * 2**20
    vmem_cap = int(phys_vmem * 0.75)
    vmem_limit = int(min(vmem_cap, max(32 * 2**20, int(need * 1.25) + 4 * 2**20)))
    # NOTE: if weight_bytes alone approaches vmem_cap (very large hid * M_pad on v7x),
    # the right fix is an extra N-tiling grid axis over M_pad; not needed at these sizes.

    cost = pl.CostEstimate(
        flops=int(2 * B_pad * (E * hid + hid * M_pad) + S * B_pad * E),
        transcendentals=0,
        bytes_accessed=int(x.size * x_itemsize + weight_bytes + B_pad * M_pad * 4))

    def build_and_call(use_lane_dense, single_buffer_weights):
        if use_lane_dense:
            x_arg = x.reshape(S, B_pad * E)                       # free view of contiguous x
            x_spec = pl.BlockSpec((TS, TB * E), lambda i, j: (j, i))
            acc = pltpu.VMEM((1, TB * E), jnp.float32)
        else:
            x_arg = x
            x_spec = pl.BlockSpec((TS, TB, E), lambda i, j: (j, i, 0))
            acc = pltpu.VMEM((TB, E), jnp.float32)

        def const_spec(shape):
            idx = lambda i, j: (0, 0)
            if single_buffer_weights:
                # Constant index_map -> fetched once; don't double-buffer the weights.
                return pl.BlockSpec(shape, idx, pipeline_mode=pl.Buffered(1))
            return pl.BlockSpec(shape, idx)

        kernel = _make_kernel(S, TB, E, use_lane_dense)

        call = pl.pallas_call(
            kernel,
            grid=(nb, ns),                                        # reduction (seq) axis last
            in_specs=[x_spec,
                      const_spec(w1_t.shape), const_spec(b1.shape),
                      const_spec(w2_t.shape), const_spec(b2.shape)],
            out_specs=pl.BlockSpec((TB, M_pad), lambda i, j: (i, 0)),
            out_shape=jax.ShapeDtypeStruct((B_pad, M_pad), jnp.float32),
            scratch_shapes=[acc],
            compiler_params=pltpu.CompilerParams(
                dimension_semantics=("parallel", "arbitrary"),
                vmem_limit_bytes=vmem_limit),
            cost_estimate=cost,
        )
        return call(x_arg, w1_t, b1, w2_t, b2)

    # Try the most optimized configuration first; degrade gracefully if this
    # Pallas/Mosaic build rejects Buffered(1) or the lane-dense relayout.
    attempts = [(lane_dense, True), (lane_dense, False)]
    if lane_dense:
        attempts.append((False, False))
    out_flat, last_err = None, None
    for ld, sb in attempts:
        try:
            out_flat = build_and_call(ld, sb)
            break
        except Exception as e:                                    # fall back, never fail to run
            last_err = e
    if out_flat is None:
        raise last_err

    out = out_flat[:B, :M]                                        # drop batch / lane padding (glue)
    return out.reshape(B, E + 1, n_out)                           # glue reshape


# ---------------------------------------------------------------------------
# Deterministic parameter init (shapes from LinearModelDecoder.__init__)
# ---------------------------------------------------------------------------
def init_params(key, emsize, hidden_size, n_out):
    M = (emsize + 1) * n_out
    k1, k2, k3, k4 = jax.random.split(key, 4)

    def lin(k, fan_in, shape):
        return jax.random.normal(k, shape, jnp.float32) / math.sqrt(fan_in)

    return dict(
        w1=lin(k1, emsize, (hidden_size, emsize)),                # Linear(emsize, hidden)
        b1=0.1 * jax.random.normal(k2, (hidden_size,), jnp.float32),
        w2=lin(k3, hidden_size, (M, hidden_size)),                # Linear(hidden, (emsize+1)*n_out)
        b2=0.1 * jax.random.normal(k4, (M,), jnp.float32),
        n_out=n_out,
    )


# Pure-JAX reference reproducing the PyTorch forward (correctness check).
def reference_forward(x_sbe, params):
    B, E = x_sbe.shape[1], x_sbe.shape[2]
    xm = x_sbe.astype(jnp.float32).mean(axis=0)                   # x.mean(0)
    h = jax.nn.relu(xm @ params["w1"].T + params["b1"])
    res = h @ params["w2"].T + params["b2"]
    return res.reshape(B, E + 1, params["n_out"])


if __name__ == "__main__":
    # SMALL shapes consistent with the module: x is (seq, batch, emsize)
    S, B, emsize, hidden_size, n_out = 8, 2, 32, 32, 10

    key = jax.random.PRNGKey(0)
    kx, kp = jax.random.split(key)
    x = jax.random.normal(kx, (S, B, emsize), jnp.float32)
    params = init_params(kp, emsize, hidden_size, n_out)

    ref = reference_forward(x, params)

    # Default fast path: bf16 x stream, f32 accumulation (loose tolerance = bf16 quantisation).
    out = jax.block_until_ready(linear_model_decoder_forward(x, params))
    assert out.shape == (B, emsize + 1, n_out)
    assert jnp.allclose(out, ref, atol=5e-2, rtol=5e-2), float(jnp.max(jnp.abs(out - ref)))

    # Exact f32 path must match the reference tightly.
    out_f32 = jax.block_until_ready(
        linear_model_decoder_forward(x, params, x_dtype=jnp.float32))
    assert jnp.allclose(out_f32, ref, atol=1e-5, rtol=1e-5), float(jnp.max(jnp.abs(out_f32 - ref)))

    print("KERNEL_OK")
</pallas_src>

<mosaic_0001>
module attributes {stable_mosaic.version = 11 : i64} {
  func.func @kernel(%arg0: i32, %arg1: i32, %arg2: memref<8x256xbf16, #tpu.memory_space<vmem>>, %arg3: memref<32x32xf32, #tpu.memory_space<vmem>>, %arg4: memref<1x32xf32, #tpu.memory_space<vmem>>, %arg5: memref<32x384xf32, #tpu.memory_space<vmem>>, %arg6: memref<1x384xf32, #tpu.memory_space<vmem>>, %arg7: memref<8x384xf32, #tpu.memory_space<vmem>>, %arg8: memref<1x256xf32, #tpu.memory_space<vmem>>) attributes {dimension_semantics = [#tpu.dimension_semantics<parallel>, #tpu.dimension_semantics<arbitrary>], iteration_bounds = array<i64: 1, 1>, scalar_prefetch = 0 : i64, scratch_operands = 1 : i64, tpu.core_type = #tpu.core_type<tc>, window_params = [{transform_indices = @transform_0, window_bounds = array<i64: 8, 256>}, {pipeline_mode = #tpu.pipeline_mode<synchronous>, transform_indices = @transform_1, window_bounds = array<i64: 32, 32>}, {pipeline_mode = #tpu.pipeline_mode<synchronous>, transform_indices = @transform_2, window_bounds = array<i64: 1, 32>}, {pipeline_mode = #tpu.pipeline_mode<synchronous>, transform_indices = @transform_3, window_bounds = array<i64: 32, 384>}, {pipeline_mode = #tpu.pipeline_mode<synchronous>, transform_indices = @transform_4, window_bounds = array<i64: 1, 384>}, {transform_indices = @transform_5, window_bounds = array<i64: 8, 384>}]} {
    %c0_i32 = arith.constant 0 : i32
    %0 = arith.cmpi eq, %arg1, %c0_i32 : i32
    %1 = arith.extui %0 : i1 to i32
    %c0_i32_0 = arith.constant 0 : i32
    %2 = arith.cmpi ne, %1, %c0_i32_0 : i32
    scf.if %2 {
      %cst_8 = arith.constant 0.000000e+00 : f32
      %13 = vector.broadcast %cst_8 : f32 to vector<1x256xf32>
      %c0_9 = arith.constant 0 : index
      %c0_10 = arith.constant 0 : index
      %14 = vector.load %arg8[%c0_9, %c0_10] : memref<1x256xf32, #tpu.memory_space<vmem>>, vector<1x256xf32>
      tpu.vector_store %arg8[%c0_9, %c0_10], %13 {strides = array<i32>} : memref<1x256xf32, #tpu.memory_space<vmem>>, vector<1x256xf32>,
    } else {
    }
    %c0 = arith.constant 0 : index
    %c0_1 = arith.constant 0 : index
    %3 = vector.load %arg8[%c0, %c0_1] : memref<1x256xf32, #tpu.memory_space<vmem>>, vector<1x256xf32>
    %c0_2 = arith.constant 0 : index
    %c0_3 = arith.constant 0 : index
    %4 = vector.load %arg2[%c0_2, %c0_3] : memref<8x256xbf16, #tpu.memory_space<vmem>>, vector<8x256xbf16>
    %5 = arith.extf %4 : vector<8x256xbf16> to vector<8x256xf32>
    %cst = arith.constant dense<0.000000e+00> : vector<256xf32>
    %6 = vector.multi_reduction <add>, %5, %cst [0] : vector<8x256xf32> to vector<256xf32>
    %7 = vector.shape_cast %6 : vector<256xf32> to vector<1x256xf32>
    %8 = arith.addf %3, %7 : vector<1x256xf32>
    %c0_4 = arith.constant 0 : index
    %c0_5 = arith.constant 0 : index
    %9 = vector.load %arg8[%c0_4, %c0_5] : memref<1x256xf32, #tpu.memory_space<vmem>>, vector<1x256xf32>
    tpu.vector_store %arg8[%c0_4, %c0_5], %8 {strides = array<i32>} : memref<1x256xf32, #tpu.memory_space<vmem>>, vector<1x256xf32>,
    %c0_i32_6 = arith.constant 0 : i32
    %10 = arith.cmpi eq, %arg1, %c0_i32_6 : i32
    %11 = arith.extui %10 : i1 to i32
    %c0_i32_7 = arith.constant 0 : i32
    %12 = arith.cmpi ne, %11, %c0_i32_7 : i32
    scf.if %12 {
      %c0_8 = arith.constant 0 : index
      %c0_9 = arith.constant 0 : index
      %13 = vector.load %arg8[%c0_8, %c0_9] : memref<1x256xf32, #tpu.memory_space<vmem>>, vector<1x256xf32>
      %14 = vector.shape_cast %13 : vector<1x256xf32> to vector<8x32xf32>
      %cst_10 = arith.constant 1.250000e-01 : f32
      %15 = vector.broadcast %cst_10 : f32 to vector<8x32xf32>
      %16 = arith.mulf %14, %15 : vector<8x32xf32>
      %c0_11 = arith.constant 0 : index
      %c0_12 = arith.constant 0 : index
      %17 = vector.load %arg3[%c0_11, %c0_12] : memref<32x32xf32, #tpu.memory_space<vmem>>, vector<32x32xf32>
      %cst_13 = arith.constant dense<0.000000e+00> : vector<8x32xf32>
      %18 = tpu.matmul %16, %17, %cst_13 {dimension_numbers = #tpu.dot_dimension_numbers<[1], [0], [0], [1], [0, 0, 1, 1], [], []>} : vector<8x32xf32>, vector<32x32xf32>, vector<8x32xf32> -> vector<8x32xf32>
      %c0_14 = arith.constant 0 : index
      %c0_15 = arith.constant 0 : index
      %19 = vector.load %arg4[%c0_14, %c0_15] : memref<1x32xf32, #tpu.memory_space<vmem>>, vector<1x32xf32>
      %20 = vector.broadcast %19 : vector<1x32xf32> to vector<8x32xf32>
      %21 = arith.addf %18, %20 : vector<8x32xf32>
      %cst_16 = arith.constant 0.000000e+00 : f32
      %22 = vector.broadcast %cst_16 : f32 to vector<8x32xf32>
      %23 = arith.maximumf %21, %22 : vector<8x32xf32>
      %c0_17 = arith.constant 0 : index
      %c0_18 = arith.constant 0 : index
      %24 = vector.load %arg5[%c0_17, %c0_18] : memref<32x384xf32, #tpu.memory_space<vmem>>, vector<32x384xf32>
      %cst_19 = arith.constant dense<0.000000e+00> : vector<8x384xf32>
      %25 = tpu.matmul %23, %24, %cst_19 {dimension_numbers = #tpu.dot_dimension_numbers<[1], [0], [0], [1], [0, 0, 1, 1], [], []>} : vector<8x32xf32>, vector<32x384xf32>, vector<8x384xf32> -> vector<8x384xf32>
      %c0_20 = arith.constant 0 : index
      %c0_21 = arith.constant 0 : index
      %26 = vector.load %arg6[%c0_20, %c0_21] : memref<1x384xf32, #tpu.memory_space<vmem>>, vector<1x384xf32>
      %27 = vector.broadcast %26 : vector<1x384xf32> to vector<8x384xf32>
      %28 = arith.addf %25, %27 : vector<8x384xf32>
      %c0_22 = arith.constant 0 : index
      %c0_23 = arith.constant 0 : index
      %29 = vector.load %arg7[%c0_22, %c0_23] : memref<8x384xf32, #tpu.memory_space<vmem>>, vector<8x384xf32>
      tpu.vector_store %arg7[%c0_22, %c0_23], %28 {strides = array<i32>} : memref<8x384xf32, #tpu.memory_space<vmem>>, vector<8x384xf32>,
    } else {
    }
    return
  }
  func.func @transform_0(%arg0: i32, %arg1: i32) -> (i32, i32) {
    %c0_i32 = arith.constant 0 : i32
    return %arg1, %arg0 : i32, i32
  }
  func.func @transform_1(%arg0: i32, %arg1: i32) -> (i32, i32) {
    %c0_i32 = arith.constant 0 : i32
    %c0_i32_0 = arith.constant 0 : i32
    %c0_i32_1 = arith.constant 0 : i32
    return %c0_i32, %c0_i32_0 : i32, i32
  }
  func.func @transform_2(%arg0: i32, %arg1: i32) -> (i32, i32) {
    %c0_i32 = arith.constant 0 : i32
    %c0_i32_0 = arith.constant 0 : i32
    %c0_i32_1 = arith.constant 0 : i32
    return %c0_i32, %c0_i32_0 : i32, i32
  }
  func.func @transform_3(%arg0: i32, %arg1: i32) -> (i32, i32) {
    %c0_i32 = arith.constant 0 : i32
    %c0_i32_0 = arith.constant 0 : i32
    %c0_i32_1 = arith.constant 0 : i32
    return %c0_i32, %c0_i32_0 : i32, i32
  }
  func.func @transform_4(%arg0: i32, %arg1: i32) -> (i32, i32) {
    %c0_i32 = arith.constant 0 : i32
    %c0_i32_0 = arith.constant 0 : i32
    %c0_i32_1 = arith.constant 0 : i32
    return %c0_i32, %c0_i32_0 : i32, i32
  }
  func.func @transform_5(%arg0: i32, %arg1: i32) -> (i32, i32) {
    %c0_i32 = arith.constant 0 : i32
    %c0_i32_0 = arith.constant 0 : i32
    return %arg0, %c0_i32 : i32, i32
  }
}

module attributes {stable_mosaic.version = 11 : i64} {
  func.func @kernel(%arg0: i32, %arg1: i32, %arg2: memref<8x256xbf16, #tpu.memory_space<vmem>>, %arg3: memref<32x32xf32, #tpu.memory_space<vmem>>, %arg4: memref<1x32xf32, #tpu.memory_space<vmem>>, %arg5: memref<32x384xf32, #tpu.memory_space<vmem>>, %arg6: memref<1x384xf32, #tpu.memory_space<vmem>>, %arg7: memref<8x384xf32, #tpu.memory_space<vmem>>, %arg8: memref<1x256xf32, #tpu.memory_space<vmem>>) attributes {dimension_semantics = [#tpu.dimension_semantics<parallel>, #tpu.dimension_semantics<arbitrary>], iteration_bounds = array<i64: 1, 1>, scalar_prefetch = 0 : i64, scratch_operands = 1 : i64, tpu.core_type = #tpu.core_type<tc>, window_params = [{transform_indices = @transform_0, window_bounds = array<i64: 8, 256>}, {pipeline_mode = #tpu.pipeline_mode<synchronous>, transform_indices = @transform_1, window_bounds = array<i64: 32, 32>}, {pipeline_mode = #tpu.pipeline_mode<synchronous>, transform_indices = @transform_2, window_bounds = array<i64: 1, 32>}, {pipeline_mode = #tpu.pipeline_mode<synchronous>, transform_indices = @transform_3, window_bounds = array<i64: 32, 384>}, {pipeline_mode = #tpu.pipeline_mode<synchronous>, transform_indices = @transform_4, window_bounds = array<i64: 1, 384>}, {transform_indices = @transform_5, window_bounds = array<i64: 8, 384>}]} {
    %c0_i32 = arith.constant 0 : i32
    %0 = arith.cmpi eq, %arg1, %c0_i32 : i32
    %1 = arith.extui %0 : i1 to i32
    %c0_i32_0 = arith.constant 0 : i32
    %2 = arith.cmpi ne, %1, %c0_i32_0 : i32
    scf.if %2 {
      %cst_8 = arith.constant 0.000000e+00 : f32
      %13 = vector.broadcast %cst_8 : f32 to vector<1x256xf32>
      %c0_9 = arith.constant 0 : index
      %c0_10 = arith.constant 0 : index
      %14 = vector.load %arg8[%c0_9, %c0_10] : memref<1x256xf32, #tpu.memory_space<vmem>>, vector<1x256xf32>
      tpu.vector_store %arg8[%c0_9, %c0_10], %13 {strides = array<i32>} : memref<1x256xf32, #tpu.memory_space<vmem>>, vector<1x256xf32>,
    } else {
    }
    %c0 = arith.constant 0 : index
    %c0_1 = arith.constant 0 : index
    %3 = vector.load %arg8[%c0, %c0_1] : memref<1x256xf32, #tpu.memory_space<vmem>>, vector<1x256xf32>
    %c0_2 = arith.constant 0 : index
    %c0_3 = arith.constant 0 : index
    %4 = vector.load %arg2[%c0_2, %c0_3] : memref<8x256xbf16, #tpu.memory_space<vmem>>, vector<8x256xbf16>
    %5 = arith.extf %4 : vector<8x256xbf16> to vector<8x256xf32>
    %cst = arith.constant dense<0.000000e+00> : vector<256xf32>
    %6 = vector.multi_reduction <add>, %5, %cst [0] : vector<8x256xf32> to vector<256xf32>
    %7 = vector.shape_cast %6 : vector<256xf32> to vector<1x256xf32>
    %8 = arith.addf %3, %7 : vector<1x256xf32>
    %c0_4 = arith.constant 0 : index
    %c0_5 = arith.constant 0 : index
    %9 = vector.load %arg8[%c0_4, %c0_5] : memref<1x256xf32, #tpu.memory_space<vmem>>, vector<1x256xf32>
    tpu.vector_store %arg8[%c0_4, %c0_5], %8 {strides = array<i32>} : memref<1x256xf32, #tpu.memory_space<vmem>>, vector<1x256xf32>,
    %c0_i32_6 = arith.constant 0 : i32
    %10 = arith.cmpi eq, %arg1, %c0_i32_6 : i32
    %11 = arith.extui %10 : i1 to i32
    %c0_i32_7 = arith.constant 0 : i32
    %12 = arith.cmpi ne, %11, %c0_i32_7 : i32
    scf.if %12 {
      %c0_8 = arith.constant 0 : index
      %c0_9 = arith.constant 0 : index
      %13 = vector.load %arg8[%c0_8, %c0_9] : memref<1x256xf32, #tpu.memory_space<vmem>>, vector<1x256xf32>
      %14 = vector.shape_cast %13 : vector<1x256xf32> to vector<8x32xf32>
      %cst_10 = arith.constant 1.250000e-01 : f32
      %15 = vector.broadcast %cst_10 : f32 to vector<8x32xf32>
      %16 = arith.mulf %14, %15 : vector<8x32xf32>
      %c0_11 = arith.constant 0 : index
      %c0_12 = arith.constant 0 : index
      %17 = vector.load %arg3[%c0_11, %c0_12] : memref<32x32xf32, #tpu.memory_space<vmem>>, vector<32x32xf32>
      %cst_13 = arith.constant dense<0.000000e+00> : vector<8x32xf32>
      %18 = tpu.matmul %16, %17, %cst_13 {dimension_numbers = #tpu.dot_dimension_numbers<[1], [0], [0], [1], [0, 0, 1, 1], [], []>} : vector<8x32xf32>, vector<32x32xf32>, vector<8x32xf32> -> vector<8x32xf32>
      %c0_14 = arith.constant 0 : index
      %c0_15 = arith.constant 0 : index
      %19 = vector.load %arg4[%c0_14, %c0_15] : memref<1x32xf32, #tpu.memory_space<vmem>>, vector<1x32xf32>
      %20 = vector.broadcast %19 : vector<1x32xf32> to vector<8x32xf32>
      %21 = arith.addf %18, %20 : vector<8x32xf32>
      %cst_16 = arith.constant 0.000000e+00 : f32
      %22 = vector.broadcast %cst_16 : f32 to vector<8x32xf32>
      %23 = arith.maximumf %21, %22 : vector<8x32xf32>
      %c0_17 = arith.constant 0 : index
      %c0_18 = arith.constant 0 : index
      %24 = vector.load %arg5[%c0_17, %c0_18] : memref<32x384xf32, #tpu.memory_space<vmem>>, vector<32x384xf32>
      %cst_19 = arith.constant dense<0.000000e+00> : vector<8x384xf32>
      %25 = tpu.matmul %23, %24, %cst_19 {dimension_numbers = #tpu.dot_dimension_numbers<[1], [0], [0], [1], [0, 0, 1, 1], [], []>} : vector<8x32xf32>, vector<32x384xf32>, vector<8x384xf32> -> vector<8x384xf32>
      %c0_20 = arith.constant 0 : index
      %c0_21 = arith.constant 0 : index
      %26 = vector.load %arg6[%c0_20, %c0_21] : memref<1x384xf32, #tpu.memory_space<vmem>>, vector<1x384xf32>
      %27 = vector.broadcast %26 : vector<1x384xf32> to vector<8x384xf32>
      %28 = arith.addf %25, %27 : vector<8x384xf32>
      %c0_22 = arith.constant 0 : index
      %c0_23 = arith.constant 0 : index
      %29 = vector.load %arg7[%c0_22, %c0_23] : memref<8x384xf32, #tpu.memory_space<vmem>>, vector<8x384xf32>
      tpu.vector_store %arg7[%c0_22, %c0_23], %28 {strides = array<i32>} : memref<8x384xf32, #tpu.memory_space<vmem>>, vector<8x384xf32>,
    } else {
    }
    return
  }
  func.func @transform_0(%arg0: i32, %arg1: i32) -> (i32, i32) {
    %c0_i32 = arith.constant 0 : i32
    return %arg1, %arg0 : i32, i32
  }
  func.func @transform_1(%arg0: i32, %arg1: i32) -> (i32, i32) {
    %c0_i32 = arith.constant 0 : i32
    %c0_i32_0 = arith.constant 0 : i32
    %c0_i32_1 = arith.constant 0 : i32
    return %c0_i32, %c0_i32_0 : i32, i32
  }
  func.func @transform_2(%arg0: i32, %arg1: i32) -> (i32, i32) {
    %c0_i32 = arith.constant 0 : i32
    %c0_i32_0 = arith.constant 0 : i32
    %c0_i32_1 = arith.constant 0 : i32
    return %c0_i32, %c0_i32_0 : i32, i32
  }
  func.func @transform_3(%arg0: i32, %arg1: i32) -> (i32, i32) {
    %c0_i32 = arith.constant 0 : i32
    %c0_i32_0 = arith.constant 0 : i32
    %c0_i32_1 = arith.constant 0 : i32
    return %c0_i32, %c0_i32_0 : i32, i32
  }
  func.func @transform_4(%arg0: i32, %arg1: i32) -> (i32, i32) {
    %c0_i32 = arith.constant 0 : i32
    %c0_i32_0 = arith.constant 0 : i32
    %c0_i32_1 = arith.constant 0 : i32
    return %c0_i32, %c0_i32_0 : i32, i32
  }
  func.func @transform_5(%arg0: i32, %arg1: i32) -> (i32, i32) {
    %c0_i32 = arith.constant 0 : i32
    %c0_i32_0 = arith.constant 0 : i32
    return %arg0, %c0_i32 : i32, i32
  }
}

module attributes {stable_mosaic.version = 11 : i64} {
  func.func @kernel(%arg0: i32, %arg1: i32, %arg2: memref<8x8x32xbf16, #tpu.memory_space<vmem>>, %arg3: memref<32x32xf32, #tpu.memory_space<vmem>>, %arg4: memref<1x32xf32, #tpu.memory_space<vmem>>, %arg5: memref<32x384xf32, #tpu.memory_space<vmem>>, %arg6: memref<1x384xf32, #tpu.memory_space<vmem>>, %arg7: memref<8x384xf32, #tpu.memory_space<vmem>>, %arg8: memref<8x32xf32, #tpu.memory_space<vmem>>) attributes {dimension_semantics = [#tpu.dimension_semantics<parallel>, #tpu.dimension_semantics<arbitrary>], iteration_bounds = array<i64: 1, 1>, scalar_prefetch = 0 : i64, scratch_operands = 1 : i64, tpu.core_type = #tpu.core_type<tc>, window_params = [{transform_indices = @transform_0, window_bounds = array<i64: 8, 8, 32>}, {pipeline_mode = #tpu.pipeline_mode<synchronous>, transform_indices = @transform_1, window_bounds = array<i64: 32, 32>}, {pipeline_mode = #tpu.pipeline_mode<synchronous>, transform_indices = @transform_2, window_bounds = array<i64: 1, 32>}, {pipeline_mode = #tpu.pipeline_mode<synchronous>, transform_indices = @transform_3, window_bounds = array<i64: 32, 384>}, {pipeline_mode = #tpu.pipeline_mode<synchronous>, transform_indices = @transform_4, window_bounds = array<i64: 1, 384>}, {transform_indices = @transform_5, window_bounds = array<i64: 8, 384>}]} {
    %c0_i32 = arith.constant 0 : i32
    %0 = arith.cmpi eq, %arg1, %c0_i32 : i32
    %1 = arith.extui %0 : i1 to i32
    %c0_i32_0 = arith.constant 0 : i32
    %2 = arith.cmpi ne, %1, %c0_i32_0 : i32
    scf.if %2 {
      %cst_9 = arith.constant 0.000000e+00 : f32
      %12 = vector.broadcast %cst_9 : f32 to vector<8x32xf32>
      %c0_10 = arith.constant 0 : index
      %c0_11 = arith.constant 0 : index
      %13 = vector.load %arg8[%c0_10, %c0_11] : memref<8x32xf32, #tpu.memory_space<vmem>>, vector<8x32xf32>
      tpu.vector_store %arg8[%c0_10, %c0_11], %12 {strides = array<i32>} : memref<8x32xf32, #tpu.memory_space<vmem>>, vector<8x32xf32>,
    } else {
    }
    %c0 = arith.constant 0 : index
    %c0_1 = arith.constant 0 : index
    %3 = vector.load %arg8[%c0, %c0_1] : memref<8x32xf32, #tpu.memory_space<vmem>>, vector<8x32xf32>
    %c0_2 = arith.constant 0 : index
    %c0_3 = arith.constant 0 : index
    %c0_4 = arith.constant 0 : index
    %4 = vector.load %arg2[%c0_2, %c0_3, %c0_4] : memref<8x8x32xbf16, #tpu.memory_space<vmem>>, vector<8x8x32xbf16>
    %5 = arith.extf %4 : vector<8x8x32xbf16> to vector<8x8x32xf32>
    %cst = arith.constant dense<0.000000e+00> : vector<8x32xf32>
    %6 = vector.multi_reduction <add>, %5, %cst [0] : vector<8x8x32xf32> to vector<8x32xf32>
    %7 = arith.addf %3, %6 : vector<8x32xf32>
    %c0_5 = arith.constant 0 : index
    %c0_6 = arith.constant 0 : index
    %8 = vector.load %arg8[%c0_5, %c0_6] : memref<8x32xf32, #tpu.memory_space<vmem>>, vector<8x32xf32>
    tpu.vector_store %arg8[%c0_5, %c0_6], %7 {strides = array<i32>} : memref<8x32xf32, #tpu.memory_space<vmem>>, vector<8x32xf32>,
    %c0_i32_7 = arith.constant 0 : i32
    %9 = arith.cmpi eq, %arg1, %c0_i32_7 : i32
    %10 = arith.extui %9 : i1 to i32
    %c0_i32_8 = arith.constant 0 : i32
    %11 = arith.cmpi ne, %10, %c0_i32_8 : i32
    scf.if %11 {
      %c0_9 = arith.constant 0 : index
      %c0_10 = arith.constant 0 : index
      %12 = vector.load %arg8[%c0_9, %c0_10] : memref<8x32xf32, #tpu.memory_space<vmem>>, vector<8x32xf32>
      %cst_11 = arith.constant 1.250000e-01 : f32
      %13 = vector.broadcast %cst_11 : f32 to vector<8x32xf32>
      %14 = arith.mulf %12, %13 : vector<8x32xf32>
      %c0_12 = arith.constant 0 : index
      %c0_13 = arith.constant 0 : index
      %15 = vector.load %arg3[%c0_12, %c0_13] : memref<32x32xf32, #tpu.memory_space<vmem>>, vector<32x32xf32>
      %cst_14 = arith.constant dense<0.000000e+00> : vector<8x32xf32>
      %16 = tpu.matmul %14, %15, %cst_14 {dimension_numbers = #tpu.dot_dimension_numbers<[1], [0], [0], [1], [0, 0, 1, 1], [], []>} : vector<8x32xf32>, vector<32x32xf32>, vector<8x32xf32> -> vector<8x32xf32>
      %c0_15 = arith.constant 0 : index
      %c0_16 = arith.constant 0 : index
      %17 = vector.load %arg4[%c0_15, %c0_16] : memref<1x32xf32, #tpu.memory_space<vmem>>, vector<1x32xf32>
      %18 = vector.broadcast %17 : vector<1x32xf32> to vector<8x32xf32>
      %19 = arith.addf %16, %18 : vector<8x32xf32>
      %cst_17 = arith.constant 0.000000e+00 : f32
      %20 = vector.broadcast %cst_17 : f32 to vector<8x32xf32>
      %21 = arith.maximumf %19, %20 : vector<8x32xf32>
      %c0_18 = arith.constant 0 : index
      %c0_19 = arith.constant 0 : index
      %22 = vector.load %arg5[%c0_18, %c0_19] : memref<32x384xf32, #tpu.memory_space<vmem>>, vector<32x384xf32>
      %cst_20 = arith.constant dense<0.000000e+00> : vector<8x384xf32>
      %23 = tpu.matmul %21, %22, %cst_20 {dimension_numbers = #tpu.dot_dimension_numbers<[1], [0], [0], [1], [0, 0, 1, 1], [], []>} : vector<8x32xf32>, vector<32x384xf32>, vector<8x384xf32> -> vector<8x384xf32>
      %c0_21 = arith.constant 0 : index
      %c0_22 = arith.constant 0 : index
      %24 = vector.load %arg6[%c0_21, %c0_22] : memref<1x384xf32, #tpu.memory_space<vmem>>, vector<1x384xf32>
      %25 = vector.broadcast %24 : vector<1x384xf32> to vector<8x384xf32>
      %26 = arith.addf %23, %25 : vector<8x384xf32>
      %c0_23 = arith.constant 0 : index
      %c0_24 = arith.constant 0 : index
      %27 = vector.load %arg7[%c0_23, %c0_24] : memref<8x384xf32, #tpu.memory_space<vmem>>, vector<8x384xf32>
      tpu.vector_store %arg7[%c0_23, %c0_24], %26 {strides = array<i32>} : memref<8x384xf32, #tpu.memory_space<vmem>>, vector<8x384xf32>,
    } else {
    }
    return
  }
  func.func @transform_0(%arg0: i32, %arg1: i32) -> (i32, i32, i32) {
    %c0_i32 = arith.constant 0 : i32
    %c0_i32_0 = arith.constant 0 : i32
    return %arg1, %arg0, %c0_i32 : i32, i32, i32
  }
  func.func @transform_1(%arg0: i32, %arg1: i32) -> (i32, i32) {
    %c0_i32 = arith.constant 0 : i32
    %c0_i32_0 = arith.constant 0 : i32
    %c0_i32_1 = arith.constant 0 : i32
    return %c0_i32, %c0_i32_0 : i32, i32
  }
  func.func @transform_2(%arg0: i32, %arg1: i32) -> (i32, i32) {
    %c0_i32 = arith.constant 0 : i32
    %c0_i32_0 = arith.constant 0 : i32
    %c0_i32_1 = arith.constant 0 : i32
    return %c0_i32, %c0_i32_0 : i32, i32
  }
  func.func @transform_3(%arg0: i32, %arg1: i32) -> (i32, i32) {
    %c0_i32 = arith.constant 0 : i32
    %c0_i32_0 = arith.constant 0 : i32
    %c0_i32_1 = arith.constant 0 : i32
    return %c0_i32, %c0_i32_0 : i32, i32
  }
  func.func @transform_4(%arg0: i32, %arg1: i32) -> (i32, i32) {
    %c0_i32 = arith.constant 0 : i32
    %c0_i32_0 = arith.constant 0 : i32
    %c0_i32_1 = arith.constant 0 : i32
    return %c0_i32, %c0_i32_0 : i32, i32
  }
  func.func @transform_5(%arg0: i32, %arg1: i32) -> (i32, i32) {
    %c0_i32 = arith.constant 0 : i32
    %c0_i32_0 = arith.constant 0 : i32
    return %arg0, %c0_i32 : i32, i32
  }
}

</mosaic_0001>

<bundles_post_ra>
// kernel: tpu_custom_call.1
= control target key start
LH: loop header
LB: loop body
LE: loop exit
PB: predicated region body
PF: predicated region fallthrough
CT: control target
= control target key end

     0   :  { %10 = vsyncpa [#allocation4], 0  ;;  %s683_s0 = inlined_call_operand.hbm [shape: bf16[8,8,32], index: 0, kind: input, shape index: {}]   ;;  %s684_s1 = inlined_call_operand.hbm [shape: f32[32,32], index: 1, kind: input, shape index: {}]   ;;  %s685_s2 = inlined_call_operand.vmem [shape: f32[1,32], index: 2, kind: input, shape index: {}]   ;;  %s686_s3 = inlined_call_operand.hbm [shape: f32[32,384], index: 3, kind: input, shape index: {}]   ;;  %s687_s4 = inlined_call_operand.vmem [shape: f32[1,384], index: 4, kind: input, shape index: {}]   ;;  %s688_s5 = inlined_call_operand.hbm [shape: f32[8,384], index: 5, kind: output, shape index: {}]  }
   0x1   :  { %11 = vsyncpa [#allocation7], 0 }
   0x2   :  { %12 = vsyncpa [#allocation5], 0  ;;  %s567_s18 = smov [#allocation6]   ;;  %s473_s22 = scalar_lea.hbm %s684_s1, 512 }
   0x3   :  { %s30_s19 = sshll.u32 %s567_s18, 4  ;;  %p474_p0 = scmp.ne.s32.totalorder %s684_s1, %s473_s22  ;;  %s31_s19 = int_to_ptr.vmem [resolvable:$true] %s30_s19 }
   0x4   :  { %p477_p1 = scmp.lt.u32.totalorder %s473_s22, %s684_s1 }
   0x6   :  { %p479_p2 = pnand %p477_p1, %p474_p0 }
   0x8   :  { %482 = shalt.err (!%p479_p2)
}
   0x9   :  { %s483_s27 = scalar_lea.vmem %s31_s19, 512  ;;  %p488_p4 = scmp.lt.s32.totalorder %s31_s19, %s31_s19 }
   0xa   :  { %p484_p3 = scmp.ne.s32.totalorder %s31_s19, %s483_s27  ;;  %p489_p5 = scmp.lt.s32.totalorder %s483_s27, %s483_s27 }
   0xc   :  { %p490_p6 = por %p489_p5, %p488_p4 }
   0xe   :  { %p491_p7 = pnand %p490_p6, %p484_p3 }
  0x10   :  { %494 = shalt.err (!%p491_p7)
}
  0x11   :  { %s568_s28 = smov 128   ;;  %s569_s29 = smov 8  }
  0x12   :  { %36 = dma.hbm_to_vmem [thread:$0]  %s684_s1, 512, %s31_s19, [#allocation7], %s568_s28, %s568_s28, %s569_s29  }
  0x13   :  { %s570_s7 = smov [#allocation3]   ;;  %s495_s11 = scalar_lea.hbm %s683_s0, 512 }
  0x14   :  { %s18_s8 = sshll.u32 %s570_s7, 4  ;;  %p496_p8 = scmp.ne.s32.totalorder %s683_s0, %s495_s11  ;;  %s19_s8 = int_to_ptr.vmem [resolvable:$true] %s18_s8 }
  0x15   :  { %p499_p9 = scmp.lt.u32.totalorder %s495_s11, %s683_s0 }
  0x17   :  { %p501_p10 = pnand %p499_p9, %p496_p8 }
  0x19   :  { %504 = shalt.err (!%p501_p10)
}
  0x1a   :  { %s505_s16 = scalar_lea.vmem %s19_s8, 512  ;;  %p510_p12 = scmp.lt.s32.totalorder %s19_s8, %s19_s8 }
  0x1b   :  { %p506_p11 = scmp.ne.s32.totalorder %s19_s8, %s505_s16  ;;  %p511_p13 = scmp.lt.s32.totalorder %s505_s16, %s505_s16 }
  0x1d   :  { %p512_p0 = por %p511_p13, %p510_p12 }
  0x1f   :  { %p513_p1 = pnand %p512_p0, %p506_p11 }
  0x21   :  { %516 = shalt.err (!%p513_p1)
}
  0x22   :  { %s571_s1 = smov 64   ;;  %s572_s17 = smov 4  }
  0x23   :  { %24 = dma.hbm_to_vmem [thread:$0]  %s683_s0, 512, %s19_s8, [#allocation4], %s571_s1, %s571_s1, %s572_s17  }
  0x24   :  { %s573_s20 = smov [#allocation8]   ;;  %s517_s24 = scalar_lea.hbm %s686_s3, 1536 }
  0x25   :  { %s44_s21 = sshll.u32 %s573_s20, 4  ;;  %p518_p2 = scmp.ne.s32.totalorder %s686_s3, %s517_s24  ;;  %s45_s21 = int_to_ptr.vmem [resolvable:$true] %s44_s21 }
  0x26   :  { %p521_p3 = scmp.lt.u32.totalorder %s517_s24, %s686_s3 }
  0x28   :  { %p523_p4 = pnand %p521_p3, %p518_p2 }
  0x2a   :  { %526 = shalt.err (!%p523_p4)
}
  0x2b   :  { %s527_s29 = scalar_lea.vmem %s45_s21, 1536  ;;  %p532_p6 = scmp.lt.s32.totalorder %s45_s21, %s45_s21 }
  0x2c   :  { %p528_p5 = scmp.ne.s32.totalorder %s45_s21, %s527_s29  ;;  %p533_p7 = scmp.lt.s32.totalorder %s527_s29, %s527_s29 }
  0x2e   :  { %p534_p8 = por %p533_p7, %p532_p6 }
  0x30   :  { %p535_p9 = pnand %p534_p8, %p528_p5 }
  0x32   :  { %538 = shalt.err (!%p535_p9)
}
  0x33   :  { %s574_s0 = smov 384   ;;  %s575_s30 = smov 24  }
  0x34   :  { %50 = dma.hbm_to_vmem [thread:$0]  %s686_s3, 1536, %s45_s21, [#allocation7], %s574_s0, %s574_s0, %s575_s30  }
  0x35   :  { %561 = dma.done.wait [#allocation4], 512  }
  0x36   :  { %562 = vsyncadd [#allocation4], 4294966784 }
  0x37   :  { %563 = dma.done.wait [#allocation7], 2048  }
  0x38   :  { %564 = vsyncadd [#allocation7], 4294965248  ;;  %vm66_vm0 = vcmask 261120   ;;  %v576_v0 = vmov 0.0|0.0   ;;  %v577_v1 = vmov 0.0   ;;  %vm578_vm1 = vmmov 0  }
  0x39   :  { %440 = vmatprep.subr.bf16.mxu0 %v576_v0  ;;  %67 = vst.msk [vmem:[#allocation2] sm:$0xff] %vm66_vm0, %v577_v1  ;;  %426 = vmatprep.mubr.msk.f32.mxu0 %vm578_vm1, %v577_v1  ;;  %v108_v2 = vld [vmem:[#allocation6] sm:$0xff]  ;;  %v109_v3 = vld [vmem:[#allocation6 + $0x8] sm:$0xff]  ;;  %v110_v4 = vld [vmem:[#allocation6 + $0x10] sm:$0xff]  ;;  %v207_v62 = vlaneseq }
  0x3a   :  { %289 = vmatprep.mubr.f32.mxu1 %v577_v1  ;;  %v441_v5 = vpack.c.bf16 %v109_v3, %v108_v2  ;;  %v111_v6 = vld [vmem:[#allocation6 + $0x18] sm:$0xff]  ;;  %v390_v7 = vld [vmem:[#allocation3] sm:$0xff]   ;;  %v405_v10 = vld [vmem:[#allocation3 + $0x8] sm:$0xff]  }
  0x3b   :  { %v391_v8 = vunpack.c.l.bf16 %v390_v7  ;;  %v392_v9 = vunpack.c.h.bf16 %v390_v7  ;;  %v406_v11 = vld [vmem:[#allocation3 + $0x10] sm:$0xff]   ;;  %v444_v12 = vpack.c.bf16 %v111_v6, %v110_v4  ;;  %v395_v13 = vunpack.c.l.bf16 %v405_v10  ;;  %v194_v15 = vld [vmem:[#allocation8 + $0x8] sm:$0xff]  ;;  %v197_v16 = vld [vmem:[#allocation8 + $0x20] sm:$0xff] }
  0x3c   :  { %442 = vmatpush3.bf16.msra.mxu0 %v441_v5  ;;  %v396_v14 = vunpack.c.h.bf16 %v405_v10  ;;  %v399_v17 = vunpack.c.l.bf16 %v406_v11  ;;  %v193_v20 = vld [vmem:[#allocation8] sm:$0xff]  ;;  %v196_v21 = vld [vmem:[#allocation8 + $0x18] sm:$0xff]  ;;  %v400_v25 = vunpack.c.h.bf16 %v406_v11  ;;  %v446_v27 = vpack.c.bf16 %v197_v16, %v194_v15  ;;  %v195_v43 = vld [vmem:[#allocation8 + $0x10] sm:$0xff] }
  0x3d   :  { %443 = vmatprep.subr.bf16.mxu0 %v576_v0  ;;  %v86_v18 = vsel %vm66_vm0, %v391_v8, 0.0  ;;  %v87_v19 = vsel %vm66_vm0, %v392_v9, 0.0  ;;  %v407_v22 = vld [vmem:[#allocation3 + $0x18] sm:$0xff]   ;;  %v89_v24 = vsel %vm66_vm0, %v395_v13, 0.0  ;;  %v448_v29 = vpack.c.bf16 %v196_v21, %v193_v20  ;;  %v198_v44 = vld [vmem:[#allocation8 + $0x28] sm:$0xff]  ;;  %v203_v49 = vld [vmem:[#allocation8 + $0x50] sm:$0xff] }
  0x3e   :  { %v88_v23 = vadd.f32 %v87_v19, %v86_v18  ;;  %v91_v26 = vsel %vm66_vm0, %v396_v14, 0.0  ;;  %v403_v30 = vunpack.c.l.bf16 %v407_v22  ;;  %v93_v31 = vsel %vm66_vm0, %v399_v17, 0.0  ;;  %447 = vmatprep.subr.bf16.mxu1 %v446_v27  ;;  %v200_v48 = vld [vmem:[#allocation8 + $0x38] sm:$0xff]  ;;  %v199_v51 = vld [vmem:[#allocation8 + $0x30] sm:$0xff]  ;;  %v202_v52 = vld [vmem:[#allocation8 + $0x48] sm:$0xff] }
  0x3f   :  { %449 = vmatpush1.bf16.msra.mxu1 %v448_v29  ;;  %v404_v33 = vunpack.c.h.bf16 %v407_v22  ;;  %v95_v34 = vsel %vm66_vm0, %v400_v25, 0.0  ;;  %v455_v46 = vpack.c.bf16 %v198_v44, %v195_v43  ;;  %v450_v50 = vpack.c.bf16 %v203_v49, %v200_v48  ;;  %v201_v53 = vld [vmem:[#allocation8 + $0x40] sm:$0xff]  ;;  %v204_v55 = vld [vmem:[#allocation8 + $0x58] sm:$0xff] }
  0x40   :  { %445 = vmatpush3.bf16.msra.mxu0 %v444_v12  ;;  %v90_v28 = vadd.f32 %v89_v24, %v88_v23  ;;  %v97_v36 = vsel %vm66_vm0, %v403_v30, 0.0  ;;  %v68_v40 = vld [vmem:[#allocation2] sm:$0xff]  ;;  %v452_v54 = vpack.c.bf16 %v202_v52, %v199_v51  ;;  %v458_v56 = vpack.c.bf16 %v204_v55, %v201_v53 }
  0x41   :  { %454 = vmatprep.subr.bf16.mxu0 %v576_v0  ;;  %v99_v38 = vsel %vm66_vm0, %v404_v33, 0.0  ;;  %451 = vmatprep.subr.bf16.mxu1 %v450_v50  ;;  %v385_v57 = vld [vmem:[%s685_s2] ss:$0 sm:$0xff]  ;;  %v208_v63 = vshrl.u32 %v207_v62, 7  ;;  %s579_s2 = smov [#allocation9]  }
  0x42   :  { %v92_v32 = vadd.f32 %v91_v26, %v90_v28  ;;  %v205_v2 = vld [vmem:[%s687_s4] sm:$0x7]  ;;  %s375_s11 = sshll.u32 %s579_s2, 4  ;;  %s376_s11 = int_to_ptr.vmem [resolvable:$true] %s375_s11 }
  0x43   :  { %453 = vmatpush1.bf16.msra.mxu1 %v452_v54  ;;  %v213_v3 = vsub.s32 1, %v208_v63  ;;  %s539_s12 = scalar_lea.vmem %s376_s11, 384  ;;  %p544_p11 = scmp.lt.s32.totalorder %s376_s11, %s376_s11 }
  0x44   :  { %v94_v35 = vadd.f32 %v93_v31, %v92_v32  ;;  %p540_p10 = scmp.ne.s32.totalorder %s376_s11, %s539_s12  ;;  %p545_p12 = scmp.lt.s32.totalorder %s539_s12, %s539_s12 }
  0x45   :  { %v214_v6 = vrot.slane %v205_v2, %v213_v3 }
  0x46   :  { %v96_v37 = vadd.f32 %v95_v34, %v94_v35  ;;  %p546_p13 = por %p545_p12, %p544_p11 }
  0x48   :  { %v98_v39 = vadd.f32 %v97_v36, %v96_v37  ;;  %p547_p0 = pnand %p546_p13, %p540_p10 }
  0x4a   :  { %v100_v41 = vadd.f32 %v99_v38, %v98_v39 }
  0x4c   :  { %v101_v42 = vadd.f32 %v100_v41, %v68_v40 }
  0x4e   :  { %102 = vst.msk [vmem:[#allocation2] sm:$0xff] %vm66_vm0, %v101_v42 }
  0x55   :  { %v106_v45 = vld [vmem:[#allocation2] sm:$0xff] }
  0x56   :  { %v107_v47 = vmul.f32 0.125, %v106_v45 }
  0x58   :  { %427 = vmatmul.mubr.msk.f32.vlgmr.msra.gmra.mrb[0].mxu0 %vm66_vm0, %v107_v47 }
  0x59   :  { %456 = vmatpush3.bf16.msra.mxu0 %v455_v46  ;;  %437 = vmatprep.mubr.msk.f32.mxu0 %vm578_vm1, %v577_v1  ;;  %v217_v1 = vsub.s32 2, %v208_v63 }
  0x5a   :  { %457 = vmatprep.subr.bf16.mxu0 %v576_v0  ;;  %v209_v0 = vsub.s32 0, %v208_v63 }
  0x5b   :  { %v218_v5 = vrot.slane %v205_v2, %v217_v1 }
  0x5c   :  { %v210_v4 = vrot.slane %v205_v2, %v209_v0 }
  0x5d   :  { %459 = vmatpush3.bf16.msra.mxu0 %v458_v56 }
 0x12b   :  { %v188_v58 = vpop.f32.mrb[0].mxu0 }
 0x12c   :  { %v189_v59 = vadd.f32 %v385_v57, %v188_v58  ;;  %v428_v60 = vpop.f32.mrb[1].mxu0 }
 0x12e   :  { %v192_v61 = vmax.f32 %v189_v59, 0.0 }
 0x130   :  { %387 = vmatmul.mubr.msk.f32.vlgmr.msra.gmra.mrb[0].mxu1 %vm66_vm0, %v192_v61  ;;  %438 = vmatmul.mubr.msk.f32.vlgmr.msra.gmra.mrb[2].mxu0 %vm66_vm0, %v192_v61 }
 0x203   :  { %v291_v7 = vpop.f32.mrb[0].mxu1  ;;  %v362_v8 = vpop.f32.mrb[2].mxu0 }
 0x204   :  { %v292_v9 = vadd.f32 %v291_v7, %v210_v4  ;;  %v363_v10 = vadd.f32 %v362_v8, %v218_v5  ;;  %v293_v11 = vpop.f32.mrb[1].mxu1  ;;  %v439_v12 = vpop.f32.mrb[3].mxu0 }
 0x205   :  { %v294_v13 = vadd.f32 %v293_v11, %v214_v6 }
 0x206   :  { %366 = vst [vmem:[#allocation9] sm:$0xff] %v292_v9  ;;  %368 = vst [vmem:[#allocation9 + $0x10] sm:$0xff] %v363_v10 }
 0x207   :  { %367 = vst [vmem:[#allocation9 + $0x8] sm:$0xff] %v294_v13 }
 0x208   :  { %550 = shalt.err (!%p547_p0)
}
 0x209   :  { %s551_s14 = scalar_lea.hbm %s688_s5, 384 }
 0x20a   :  { %p552_p1 = scmp.ne.s32.totalorder %s688_s5, %s551_s14  ;;  %p555_p2 = scmp.lt.u32.totalorder %s551_s14, %s688_s5 }
 0x20c   :  { %p557_p3 = pnand %p555_p2, %p552_p1 }
 0x20e   :  { %560 = shalt.err (!%p557_p3)
}
 0x20f   :  { %378 = dma.vmem_to_hbm [thread:$0]  %s376_s11, 384, %s688_s5, [#allocation5]  }
 0x210   :  { %565 = dma.done.wait [#allocation5], 384  }
 0x211   :  { %566 = vsyncadd [#allocation5], 4294966912 }
 0x212   :  { %382 = vsyncpa [#allocation4], 1 }
 0x213   :  { %383 = vsyncpa [#allocation7], 1 }
 0x214   :  { %384 = vsyncpa [#allocation5], 1 }

</bundles_post_ra>
